<compile_context>
chip_gen: v5e
topology: v5e:2x2
jax: 0.10.0
libtpu: 0.0.40
codegen_flags: <defaults>
</compile_context>

<pallas_src>
import functools

import jax
import jax.numpy as jnp
from jax.experimental import pallas as pl
from jax.experimental.pallas import tpu as pltpu


def _conv2d_valid_kernel(x_ref, wb_ref, o_ref, *, n, cin, cout, kh, kw, h, ho, wo):
    # x_ref : (N*Cin*H, W)                  f32 in VMEM
    # wb_ref: (Cout*Cin*KH*KW + Cout,)      f32 in SMEM (flat OIHW weights, then bias)
    # o_ref : (N*Cout*Ho, Wo)               f32 in VMEM
    x = x_ref[...]                          # whole input fits in a single vreg
    n_wts = cout * cin * kh * kw            # offset of bias inside wb_ref

    # One small VPU accumulator per (batch, out-channel), seeded with the bias.
    accs = [
        jnp.full((ho, wo), wb_ref[n_wts + oc], dtype=jnp.float32)
        for _ in range(n)
        for oc in range(cout)
    ]

    # Fully unrolled VALID conv: hoist each shifted window out of the oc loop
    # so it is sliced once and reused by every output channel.
    for b in range(n):
        for ic in range(cin):
            row0 = (b * cin + ic) * h
            for ki in range(kh):
                for kj in range(kw):
                    win = x[row0 + ki: row0 + ki + ho, kj: kj + wo]
                    for oc in range(cout):
                        wv = wb_ref[((oc * cin + ic) * kh + ki) * kw + kj]
                        idx = b * cout + oc
                        accs[idx] = accs[idx] + wv * win

    # Single store of all channels: (N*Cout*Ho, Wo) slab via sublane concat.
    o_ref[...] = jnp.concatenate(accs, axis=0).astype(o_ref.dtype)


def custom_conv2d(x, weight, bias):
    """VALID 2D conv (stride 1, no padding), NCHW input, OIHW weight.

    x: (N, Cin, H, W) f32, weight: (Cout, Cin, KH, KW) f32, bias: (Cout,) f32.
    Returns (N, Cout, H-KH+1, W-KW+1).
    """
    N, Cin, H, W = x.shape
    Cout, Cin_w, KH, KW = weight.shape
    assert Cin == Cin_w, (Cin, Cin_w)
    Ho, Wo = H - KH + 1, W - KW + 1

    # Squeeze the size-1 dims: ship x as a flat (N*Cin*H, W) 2D tile.
    x2d = x.reshape(N * Cin * H, W).astype(jnp.float32)
    # Merge weights + bias into ONE flattened SMEM operand (10 scalars here).
    wb = jnp.concatenate(
        [weight.reshape(-1), bias.reshape(-1)]
    ).astype(jnp.float32)

    kernel = functools.partial(
        _conv2d_valid_kernel,
        n=N, cin=Cin, cout=Cout, kh=KH, kw=KW, h=H, ho=Ho, wo=Wo,
    )

    out_bytes = N * Cout * Ho * Wo * 4
    out2d = pl.pallas_call(
        kernel,
        out_shape=jax.ShapeDtypeStruct((N * Cout * Ho, Wo), x.dtype),
        in_specs=[
            pl.BlockSpec(memory_space=pltpu.MemorySpace.VMEM),
            pl.BlockSpec(memory_space=pltpu.MemorySpace.SMEM),
        ],
        out_specs=pl.BlockSpec(memory_space=pltpu.MemorySpace.VMEM),
        cost_estimate=pl.CostEstimate(
            flops=2 * N * Cout * Cin * KH * KW * Ho * Wo,
            transcendentals=0,
            bytes_accessed=int(x2d.size * 4 + wb.size * 4 + out_bytes),
        ),
    )(x2d, wb)

    return out2d.reshape(N, Cout, Ho, Wo)


def custom_conv_test_model_forward(x, weight, bias):
    y = custom_conv2d(x, weight, bias)  # CustomConv.forward (act = Identity)
    # nn.Dropout(p=0) is a no-op in the forward pass.
    return y


if __name__ == "__main__":
    key = jax.random.PRNGKey(0)

    # Exact parameters from the PyTorch module.
    weight = jnp.array(
        [[[[0.1, -2.0],
           [1.0,  0.1]]],
         [[[0.1,  2.0],
           [-1.0, 0.1]]]],
        dtype=jnp.float32,
    )  # (2, 1, 2, 2)
    bias = jnp.array([0.1, 1.0], dtype=jnp.float32)  # (2,)

    # INPUT_SIZE = [1, 1, 4, 4]
    x = jax.random.normal(key, (1, 1, 4, 4), dtype=jnp.float32)

    y = custom_conv_test_model_forward(x, weight, bias)
    y = jax.block_until_ready(y)

    # Pure-JAX reference for the same semantics.
    ref = jax.lax.conv_general_dilated(
        x, weight, window_strides=(1, 1), padding="VALID",
        dimension_numbers=("NCHW", "OIHW", "NCHW"),
    ) + bias.reshape(1, 2, 1, 1)

    assert y.shape == (1, 2, 3, 3), y.shape
    assert jnp.allclose(y, ref, atol=1e-5), float(jnp.max(jnp.abs(y - ref)))
    print("KERNEL_OK")
</pallas_src>

<mosaic_0001>
module attributes {stable_mosaic.version = 11 : i64} {
  func.func @_conv2d_valid_kernel(%arg0: memref<4x4xf32, #tpu.memory_space<vmem>>, %arg1: memref<10xf32, #tpu.memory_space<smem>>, %arg2: memref<6x3xf32, #tpu.memory_space<vmem>>) attributes {dimension_semantics = [], scalar_prefetch = 0 : i64, scratch_operands = 0 : i64, tpu.core_type = #tpu.core_type<tc>} {
    %c0 = arith.constant 0 : index
    %c0_0 = arith.constant 0 : index
    %0 = vector.load %arg0[%c0, %c0_0] : memref<4x4xf32, #tpu.memory_space<vmem>>, vector<4x4xf32>
    %c8 = arith.constant 8 : index
    %1 = memref.load %arg1[%c8] : memref<10xf32, #tpu.memory_space<smem>>
    %2 = vector.broadcast %1 : f32 to vector<3x3xf32>
    %c9 = arith.constant 9 : index
    %3 = memref.load %arg1[%c9] : memref<10xf32, #tpu.memory_space<smem>>
    %4 = vector.broadcast %3 : f32 to vector<3x3xf32>
    %5 = vector.extract_strided_slice %0 {offsets = [0, 0], sizes = [3, 3], strides = [1, 1]} : vector<4x4xf32> to vector<3x3xf32>
    %c0_1 = arith.constant 0 : index
    %6 = memref.load %arg1[%c0_1] : memref<10xf32, #tpu.memory_space<smem>>
    %7 = vector.broadcast %6 : f32 to vector<3x3xf32>
    %8 = arith.mulf %7, %5 : vector<3x3xf32>
    %9 = arith.addf %2, %8 : vector<3x3xf32>
    %c4 = arith.constant 4 : index
    %10 = memref.load %arg1[%c4] : memref<10xf32, #tpu.memory_space<smem>>
    %11 = vector.broadcast %10 : f32 to vector<3x3xf32>
    %12 = arith.mulf %11, %5 : vector<3x3xf32>
    %13 = arith.addf %4, %12 : vector<3x3xf32>
    %14 = vector.extract_strided_slice %0 {offsets = [0, 1], sizes = [3, 3], strides = [1, 1]} : vector<4x4xf32> to vector<3x3xf32>
    %c1 = arith.constant 1 : index
    %15 = memref.load %arg1[%c1] : memref<10xf32, #tpu.memory_space<smem>>
    %16 = vector.broadcast %15 : f32 to vector<3x3xf32>
    %17 = arith.mulf %16, %14 : vector<3x3xf32>
    %18 = arith.addf %9, %17 : vector<3x3xf32>
    %c5 = arith.constant 5 : index
    %19 = memref.load %arg1[%c5] : memref<10xf32, #tpu.memory_space<smem>>
    %20 = vector.broadcast %19 : f32 to vector<3x3xf32>
    %21 = arith.mulf %20, %14 : vector<3x3xf32>
    %22 = arith.addf %13, %21 : vector<3x3xf32>
    %23 = vector.extract_strided_slice %0 {offsets = [1, 0], sizes = [3, 3], strides = [1, 1]} : vector<4x4xf32> to vector<3x3xf32>
    %c2 = arith.constant 2 : index
    %24 = memref.load %arg1[%c2] : memref<10xf32, #tpu.memory_space<smem>>
    %25 = vector.broadcast %24 : f32 to vector<3x3xf32>
    %26 = arith.mulf %25, %23 : vector<3x3xf32>
    %27 = arith.addf %18, %26 : vector<3x3xf32>
    %c6 = arith.constant 6 : index
    %28 = memref.load %arg1[%c6] : memref<10xf32, #tpu.memory_space<smem>>
    %29 = vector.broadcast %28 : f32 to vector<3x3xf32>
    %30 = arith.mulf %29, %23 : vector<3x3xf32>
    %31 = arith.addf %22, %30 : vector<3x3xf32>
    %32 = vector.extract_strided_slice %0 {offsets = [1, 1], sizes = [3, 3], strides = [1, 1]} : vector<4x4xf32> to vector<3x3xf32>
    %c3 = arith.constant 3 : index
    %33 = memref.load %arg1[%c3] : memref<10xf32, #tpu.memory_space<smem>>
    %34 = vector.broadcast %33 : f32 to vector<3x3xf32>
    %35 = arith.mulf %34, %32 : vector<3x3xf32>
    %36 = arith.addf %27, %35 : vector<3x3xf32>
    %c7 = arith.constant 7 : index
    %37 = memref.load %arg1[%c7] : memref<10xf32, #tpu.memory_space<smem>>
    %38 = vector.broadcast %37 : f32 to vector<3x3xf32>
    %39 = arith.mulf %38, %32 : vector<3x3xf32>
    %40 = arith.addf %31, %39 : vector<3x3xf32>
    %41 = tpu.concatenate %36, %40 in 0 : vector<3x3xf32>, vector<3x3xf32> -> vector<6x3xf32>
    %c0_2 = arith.constant 0 : index
    %c0_3 = arith.constant 0 : index
    %42 = vector.load %arg2[%c0_2, %c0_3] : memref<6x3xf32, #tpu.memory_space<vmem>>, vector<6x3xf32>
    tpu.vector_store %arg2[%c0_2, %c0_3], %41 {strides = array<i32>} : memref<6x3xf32, #tpu.memory_space<vmem>>, vector<6x3xf32>,
    return
  }
}

</mosaic_0001>

<bundles_post_ra>
// kernel: tpu_custom_call.1
= control target key start
LH: loop header
LB: loop body
LE: loop exit
PB: predicated region body
PF: predicated region fallthrough
CT: control target
= control target key end

     0   :  { %7 = vsyncpa [#allocation3], 0  ;;  %s191_s0 = inlined_call_operand.hbm [shape: f32[4,4], index: 0, kind: input, shape index: {}]   ;;  %s192_s1 = inlined_call_operand.hbm [shape: f32[10], index: 1, kind: input, shape index: {}]   ;;  %s193_s2 = inlined_call_operand.vmem [shape: f32[6,3], index: 2, kind: output, shape index: {}]  }
   0x1   :  { %s14_s11 = sshll.u32 %s191_s0, 4  ;;  %s15_s11 = int_to_ptr.hbm [resolvable:$true] %s14_s11 }
   0x2   :  { %8 = vsyncpa [#allocation4], 0  ;;  %s164_s12 = smov [#allocation2]   ;;  %s25_s16 = sshll.u32 %s192_s1, 4  ;;  %s26_s16 = int_to_ptr.hbm [resolvable:$true] %s25_s16 }
   0x3   :  { %s16_s13 = sshll.u32 %s164_s12, 4  ;;  %s165_s17 = smov [#allocation5]   ;;  %s17_s13 = int_to_ptr.vmem [resolvable:$true] %s16_s13 }
   0x4   :  { %19 = dma.hbm_to_vmem [thread:$0]  %s15_s11, 64, %s17_s13, [#allocation3]  }
   0x5   :  { %28 = dma.hbm_to_smem %s26_s16, 16, %s165_s17, [#allocation4]  }
   0x6   :  { %160 = dma.done.wait [#allocation3], 64  }
   0x7   :  { %161 = vsyncadd [#allocation3], 4294967232 }
   0x8   :  { %162 = dma.done.wait [#allocation4], 16  }
   0x9   :  { %163 = vsyncadd [#allocation4], 4294967280 }
   0xa   :  { %37 = sfence }
   0xb   :  { %s116_s18 = sld [smem:[#allocation5 + $0x5]]  ;;  %v38_v0 = vld [vmem:[#allocation2] sm:$0xf]  ;;  %s166_s21 = smov 127   ;;  %vm102_vm0 = vcmask 1042432   ;;  %vm104_vm1 = vcmask 21504  }
   0xc   :  { %s120_s0 = sld [smem:[#allocation5 + $0x7]] }
   0xd   :  { %s115_s19 = sld [smem:[#allocation5 + $0x1]] }
   0xe   :  { %s119_s20 = sld [smem:[#allocation5 + $0x3]] }
   0xf   :  { %s114_s1 = sld [smem:[#allocation5 + $0x4]] }
  0x10   :  { %s113_s22 = sld [smem:[#allocation5 + $0x9]] }
  0x11   :  { %v60_v1 = vstv %s116_s18  ;;  %s118_s23 = sld [smem:[#allocation5 + $0x6]] }
  0x12   :  { %v61_v2 = vmul.f32 %v60_v1, %v38_v0  ;;  %v91_v3 = vstv %s120_s0  ;;  %s43_s24 = sld [smem:[#allocation5]] }
  0x13   :  { %v92_v4 = vmul.f32 %v91_v3, %v38_v0  ;;  %v52_v7 = vstv %s115_s19  ;;  %s117_s25 = sld [smem:[#allocation5 + $0x2]] }
  0x14   :  { %63 = vrot.lane.b32.xlu0 %v61_v2, %s166_s21  ;;  %v82_v5 = vstv %s119_s20  ;;  %v53_v9 = vmul.f32 %v52_v7, %v38_v0  ;;  %s112_s26 = sld [smem:[#allocation5 + $0x8]] }
  0x15   :  { %v94_v6 = vrot.slane %v92_v4, 1  ;;  %v83_v8 = vmul.f32 %v82_v5, %v38_v0  ;;  %v48_v11 = vstv %s114_s1 }
  0x16   :  { %v49_v12 = vmul.f32 %v48_v11, %v38_v0  ;;  %v42_v13 = vstv %s113_s22 }
  0x17   :  { %95 = vrot.lane.b32.xlu1 %v94_v6, %s166_s21  ;;  %v85_v10 = vrot.slane %v83_v8, 1  ;;  %v75_v14 = vstv %s118_s23 }
  0x18   :  { %v50_v15 = vadd.f32 %v49_v12, %v42_v13  ;;  %v76_v16 = vmul.f32 %v75_v14, %v38_v0  ;;  %v44_v17 = vstv %s43_s24 }
  0x19   :  { %v68_v19 = vstv %s117_s25  ;;  %v45_v22 = vmul.f32 %v44_v17, %v38_v0 }
  0x1a   :  { %v78_v21 = vrot.slane %v76_v16, 1  ;;  %v40_v23 = vstv %s112_s26  ;;  %v69_v25 = vmul.f32 %v68_v19, %v38_v0 }
  0x1b   :  { %v46_v27 = vadd.f32 %v45_v22, %v40_v23 }
  0x1c   :  { %55 = vrot.lane.b32.xlu0 %v53_v9, %s166_s21  ;;  %v71_v28 = vrot.slane %v69_v25, 1 }
  0x1f   :  { %86 = vrot.lane.b32.xlu1 %v85_v10, %s166_s21 }
  0x86   :  { %v64_v18 = vpop.permute.xlu0 %63 }
  0x87   :  { %v66_v20 = vadd.f32 %v64_v18, %v50_v15 }
  0x89   :  { %v96_v24 = vpop.permute.xlu1 %95  ;;  %v80_v26 = vadd.f32 %v78_v21, %v66_v20 }
  0x8b   :  { %v98_v30 = vadd.f32 %v96_v24, %v80_v26 }
  0x8d   :  { %v100_v34 = vrot.slane %v98_v30, 5 }
  0x8e   :  { %v56_v29 = vpop.permute.xlu0 %55 }
  0x8f   :  { %v58_v31 = vadd.f32 %v56_v29, %v46_v27 }
  0x91   :  { %v87_v32 = vpop.permute.xlu1 %86  ;;  %v73_v33 = vadd.f32 %v71_v28, %v58_v31 }
  0x93   :  { %v89_v35 = vadd.f32 %v87_v32, %v73_v33 }
  0x95   :  { %v103_v36 = vsel %vm102_vm0, %v89_v35, %v100_v34 }
  0x96   :  { %105 = vst.msk [vmem:[%s193_s2] sm:$0x3f] %vm104_vm1, %v103_v36 }
  0x97   :  { %110 = vsyncpa [#allocation3], 1 }
  0x98   :  { %111 = vsyncpa [#allocation4], 1 }

</bundles_post_ra>
